<compile_context>
chip_gen: v7x
topology: tpu7x:2x2x1
jax: 0.10.0
libtpu: 0.0.40
codegen_flags: <defaults>
</compile_context>

<pallas_src>
import functools
import math

import jax
import jax.numpy as jnp
from jax import lax
from jax.experimental import pallas as pl
from jax.experimental.pallas import tpu as pltpu


def _round_up(x, m):
    return ((x + m - 1) // m) * m


def _wmse_kernel(yp_ref, yt_ref, w_ref, out_ref, acc_ref, *,
                 tm, chunk, num_rows, tiles_per_part, need_mask):
    p = pl.program_id(0)   # part axis ("parallel"; 1 part by default)
    i = pl.program_id(1)   # sequential reduction axis within a part

    # Reset the per-part vector accumulator at the start of every part.
    @pl.when(i == 0)
    def _():
        acc_ref[...] = jnp.zeros_like(acc_ref)

    tile_start = (p * tiles_per_part + i) * tm
    n_chunks = tm // chunk

    def accumulate(masked):
        # Strip-mine the (tm, C) VMEM block in `chunk`-row pieces so the f32
        # temporaries (d, d2) stay bounded even for multi-MiB DMA blocks.
        def body(j, carry):
            start = j * chunk
            if not isinstance(start, int):
                start = pl.multiple_of(start, chunk)
            d = (yp_ref[pl.ds(start, chunk), :].astype(jnp.float32)
                 - yt_ref[pl.ds(start, chunk), :].astype(jnp.float32))
            if masked:
                rows = (lax.broadcasted_iota(jnp.int32, d.shape, 0)
                        + tile_start + start)
                d = jnp.where(rows < num_rows, d, 0.0)
            d2 = d * d
            # Fold (chunk, C) -> (8, C): elementwise vreg adds between sublane
            # groups; the single cross-lane reduce happens only at finalize.
            acc_ref[...] += d2.reshape(chunk // 8, 8, d2.shape[-1]).sum(axis=0)
            return carry

        if n_chunks == 1:
            body(0, 0)
        else:
            lax.fori_loop(0, n_chunks, body, 0)

    if need_mask:
        # Only the true tail tile pays for iota + compare + select.
        is_tail = tile_start + tm > num_rows

        @pl.when(is_tail)
        def _():
            accumulate(masked=True)

        @pl.when(jnp.logical_not(is_tail))
        def _():
            accumulate(masked=False)
    else:
        accumulate(masked=False)

    # Finalize this part: apply weights + one cross-lane (XLU) reduce.
    @pl.when(i == pl.num_programs(1) - 1)
    def _():
        w = w_ref[...].astype(jnp.float32)            # (1, C)
        partial = jnp.sum(acc_ref[...] * w)           # scalar partial sum
        out_ref[...] = jnp.broadcast_to(partial, out_ref.shape)


def weighted_mse_loss(y_pred, y_true, weights, *,
                      target_block_bytes=4 * 1024 * 1024,
                      num_parts=1):
    """mean(weights * (y_pred - y_true)**2) with a Pallas TPU kernel.

    y_pred / y_true: (B, C) floats (f32 or bf16; upcast to f32 in-kernel).
    weights: (C,), broadcast over rows (per-feature weights, matching the
    PyTorch module). Returns a float32 scalar.

    num_parts: leave 1 on v5e/v6e (single TensorCore); pass 2 on v7x to split
    the row range across both TensorCores.
    """
    B, C = y_pred.shape
    assert y_true.shape == (B, C)
    assert weights.shape == (C,)

    itemsize = max(jnp.dtype(y_pred.dtype).itemsize,
                   jnp.dtype(y_true.dtype).itemsize)

    # ---- Lane-dense layout for narrow / non-128-multiple feature dims. ----
    # (B, C) -> (B//k, k*C) with (k*C) % 128 == 0; folded column j maps to
    # feature j % C, so the weights are tiled k times.  Pure layout plumbing.
    k = 1
    if C % 128 != 0:
        k_cand = 128 // math.gcd(C, 128)
        if k_cand > 1 and B % k_cand == 0:
            k = k_cand
    if k > 1:
        yp = y_pred.reshape(B // k, k * C)
        yt = y_true.reshape(B // k, k * C)
        w = jnp.tile(weights, k)
    else:
        yp, yt, w = y_pred, y_true, weights
    Br, Ce = yp.shape

    # ---- Generation-aware VMEM limit (v5e/v6e: 128 MiB phys, v7x: 64 MiB). --
    try:
        vmem_cap = int(pltpu.get_tpu_info().vmem_capacity_bytes)
    except Exception:
        vmem_cap = 64 * 1024 * 1024
    vmem_limit = min(64 * 1024 * 1024, max(32 * 1024 * 1024, vmem_cap // 2))

    # ---- Row-tile sizing by bytes (amortize ~0.35 us per grid step). -------
    # 2 inputs x 2 pipeline buffers x block_bytes, with headroom left for the
    # strip-mined f32 temporaries and the (8, Ce) accumulator.
    block_budget = max(Ce * itemsize * 8,
                       min(target_block_bytes, (vmem_limit * 3 // 4) // 4))
    rows_fit = max(8, (block_budget // (Ce * itemsize)) // 8 * 8)
    tm = min(rows_fit, _round_up(Br, 8))
    if tm > 512 and tm % 512 != 0:
        tm = _round_up(tm, 512)       # masked tail absorbs the overhang
    chunk = min(512, tm)              # bounds in-kernel f32 temporaries

    num_tiles = (Br + tm - 1) // tm
    n_parts = 1
    if num_parts > 1 and num_tiles % num_parts == 0:
        n_parts = num_parts           # only split when it costs no extra DMA
    tpp = num_tiles // n_parts
    need_mask = (Br % tm) != 0        # only the real tail tile is masked

    def row_map(p, i):
        return (p * tpp + i, 0)

    kernel = functools.partial(
        _wmse_kernel, tm=tm, chunk=chunk, num_rows=Br,
        tiles_per_part=tpp, need_mask=need_mask)

    cost = pl.CostEstimate(
        flops=3 * B * C,
        transcendentals=0,
        bytes_accessed=2 * B * C * itemsize + C * 4 + n_parts * 8 * 128 * 4)

    out = pl.pallas_call(
        kernel,
        out_shape=jax.ShapeDtypeStruct((n_parts, 8, 128), jnp.float32),
        grid=(n_parts, tpp),
        in_specs=[
            pl.BlockSpec((tm, Ce), row_map),
            pl.BlockSpec((tm, Ce), row_map),
            pl.BlockSpec((1, Ce), lambda p, i: (0, 0)),
        ],
        out_specs=pl.BlockSpec((1, 8, 128), lambda p, i: (p, 0, 0)),
        scratch_shapes=[pltpu.VMEM((8, Ce), jnp.float32)],
        compiler_params=pltpu.CompilerParams(
            # TODO(synk): on v7x, pass num_parts=2 and consider
            # pltpu.CORE_PARALLEL on the leading axis to shard across both TCs.
            dimension_semantics=("parallel", "arbitrary"),
            vmem_limit_bytes=vmem_limit,
        ),
        cost_estimate=cost,
    )(yp, yt, w.reshape(1, Ce))

    inv_count = jnp.float32(1.0 / float(B * C))
    return jnp.sum(out[:, 0, 0]) * inv_count


if __name__ == "__main__":
    key = jax.random.PRNGKey(0)
    k1, k2, k3 = jax.random.split(key, 3)

    # Test 1: small aligned shape (single tile, single part, no mask).
    B, C = 16, 128
    y_pred = jax.random.normal(k1, (B, C), dtype=jnp.float32)
    y_true = jax.random.normal(k2, (B, C), dtype=jnp.float32)
    weights = jnp.abs(jax.random.normal(k3, (C,), dtype=jnp.float32)) + 0.5

    loss = jax.block_until_ready(weighted_mse_loss(y_pred, y_true, weights))
    ref = jnp.mean(jnp.square(y_pred - y_true) * weights)
    assert jnp.allclose(loss, ref, rtol=1e-5, atol=1e-6), (loss, ref)

    # Test 2: narrow feature dim -> lane-dense fold path ((64,4) -> (2,128)).
    B2, C2 = 64, 4
    yp2 = jax.random.normal(k1, (B2, C2), dtype=jnp.float32)
    yt2 = jax.random.normal(k2, (B2, C2), dtype=jnp.float32)
    w2 = jnp.abs(jax.random.normal(k3, (C2,), dtype=jnp.float32)) + 0.5
    loss2 = jax.block_until_ready(weighted_mse_loss(yp2, yt2, w2))
    ref2 = jnp.mean(jnp.square(yp2 - yt2) * w2)
    assert jnp.allclose(loss2, ref2, rtol=1e-5, atol=1e-6), (loss2, ref2)

    # Test 3: multi-tile + strip-mined chunks + masked tail + 2-part split.
    B3, C3 = 1536, 128
    yp3 = jax.random.normal(k1, (B3, C3), dtype=jnp.float32)
    yt3 = jax.random.normal(k2, (B3, C3), dtype=jnp.float32)
    w3 = jnp.abs(jax.random.normal(k3, (C3,), dtype=jnp.float32)) + 0.5
    loss3 = jax.block_until_ready(
        weighted_mse_loss(yp3, yt3, w3,
                          target_block_bytes=1024 * 128 * 4, num_parts=2))
    ref3 = jnp.mean(jnp.square(yp3 - yt3) * w3)
    assert jnp.allclose(loss3, ref3, rtol=1e-5, atol=1e-6), (loss3, ref3)

    # Test 4: ragged row count with small tiles (masked trailing tile).
    B4, C4 = 50, 128
    yp4 = jax.random.normal(k1, (B4, C4), dtype=jnp.float32)
    yt4 = jax.random.normal(k2, (B4, C4), dtype=jnp.float32)
    w4 = jnp.abs(jax.random.normal(k3, (C4,), dtype=jnp.float32)) + 0.5
    loss4 = jax.block_until_ready(
        weighted_mse_loss(yp4, yt4, w4, target_block_bytes=16 * 128 * 4))
    ref4 = jnp.mean(jnp.square(yp4 - yt4) * w4)
    assert jnp.allclose(loss4, ref4, rtol=1e-5, atol=1e-6), (loss4, ref4)

    print("KERNEL_OK")
</pallas_src>

<mosaic_0001>
module attributes {stable_mosaic.version = 11 : i64} {
  func.func @_wmse_kernel(%arg0: i32, %arg1: i32, %arg2: memref<16x128xf32, #tpu.memory_space<vmem>>, %arg3: memref<16x128xf32, #tpu.memory_space<vmem>>, %arg4: memref<1x128xf32, #tpu.memory_space<vmem>>, %arg5: memref<1x8x128xf32, #tpu.memory_space<vmem>>, %arg6: memref<8x128xf32, #tpu.memory_space<vmem>>) attributes {dimension_semantics = [#tpu.dimension_semantics<parallel>, #tpu.dimension_semantics<arbitrary>], iteration_bounds = array<i64: 1, 1>, scalar_prefetch = 0 : i64, scratch_operands = 1 : i64, tpu.core_type = #tpu.core_type<tc>, window_params = [{transform_indices = @transform_0, window_bounds = array<i64: 16, 128>}, {transform_indices = @transform_1, window_bounds = array<i64: 16, 128>}, {pipeline_mode = #tpu.pipeline_mode<synchronous>, transform_indices = @transform_2, window_bounds = array<i64: 1, 128>}, {transform_indices = @transform_3, window_bounds = array<i64: 1, 8, 128>}]} {
    %c0_i32 = arith.constant 0 : i32
    %0 = arith.cmpi eq, %arg1, %c0_i32 : i32
    %1 = arith.extui %0 : i1 to i32
    %c0_i32_0 = arith.constant 0 : i32
    %2 = arith.cmpi ne, %1, %c0_i32_0 : i32
    scf.if %2 {
      %cst_10 = arith.constant 0.000000e+00 : f32
      %15 = vector.broadcast %cst_10 : f32 to vector<8x128xf32>
      %c0_11 = arith.constant 0 : index
      %c0_12 = arith.constant 0 : index
      %16 = vector.load %arg6[%c0_11, %c0_12] : memref<8x128xf32, #tpu.memory_space<vmem>>, vector<8x128xf32>
      tpu.vector_store %arg6[%c0_11, %c0_12], %15 {strides = array<i32>} : memref<8x128xf32, #tpu.memory_space<vmem>>, vector<8x128xf32>,
    } else {
    }
    %c0 = arith.constant 0 : index
    %c0_1 = arith.constant 0 : index
    %3 = vector.load %arg2[%c0, %c0_1] : memref<16x128xf32, #tpu.memory_space<vmem>>, vector<16x128xf32>
    %c0_2 = arith.constant 0 : index
    %c0_3 = arith.constant 0 : index
    %4 = vector.load %arg3[%c0_2, %c0_3] : memref<16x128xf32, #tpu.memory_space<vmem>>, vector<16x128xf32>
    %5 = arith.subf %3, %4 : vector<16x128xf32>
    %6 = arith.mulf %5, %5 : vector<16x128xf32>
    %c0_4 = arith.constant 0 : index
    %c0_5 = arith.constant 0 : index
    %7 = vector.load %arg6[%c0_4, %c0_5] : memref<8x128xf32, #tpu.memory_space<vmem>>, vector<8x128xf32>
    %8 = vector.shape_cast %6 : vector<16x128xf32> to vector<2x8x128xf32>
    %cst = arith.constant dense<0.000000e+00> : vector<8x128xf32>
    %9 = vector.multi_reduction <add>, %8, %cst [0] : vector<2x8x128xf32> to vector<8x128xf32>
    %10 = arith.addf %7, %9 : vector<8x128xf32>
    %c0_6 = arith.constant 0 : index
    %c0_7 = arith.constant 0 : index
    %11 = vector.load %arg6[%c0_6, %c0_7] : memref<8x128xf32, #tpu.memory_space<vmem>>, vector<8x128xf32>
    tpu.vector_store %arg6[%c0_6, %c0_7], %10 {strides = array<i32>} : memref<8x128xf32, #tpu.memory_space<vmem>>, vector<8x128xf32>,
    %c0_i32_8 = arith.constant 0 : i32
    %12 = arith.cmpi eq, %arg1, %c0_i32_8 : i32
    %13 = arith.extui %12 : i1 to i32
    %c0_i32_9 = arith.constant 0 : i32
    %14 = arith.cmpi ne, %13, %c0_i32_9 : i32
    scf.if %14 {
      %c0_10 = arith.constant 0 : index
      %c0_11 = arith.constant 0 : index
      %15 = vector.load %arg4[%c0_10, %c0_11] : memref<1x128xf32, #tpu.memory_space<vmem>>, vector<1x128xf32>
      %c0_12 = arith.constant 0 : index
      %c0_13 = arith.constant 0 : index
      %16 = vector.load %arg6[%c0_12, %c0_13] : memref<8x128xf32, #tpu.memory_space<vmem>>, vector<8x128xf32>
      %17 = vector.broadcast %15 : vector<1x128xf32> to vector<8x128xf32>
      %18 = arith.mulf %16, %17 : vector<8x128xf32>
      %19 = vector.shape_cast %18 : vector<8x128xf32> to vector<1x8x128xf32>
      %cst_14 = arith.constant dense<0.000000e+00> : vector<1xf32>
      %20 = vector.multi_reduction <add>, %19, %cst_14 [1, 2] : vector<1x8x128xf32> to vector<1xf32>
      %21 = vector.shape_cast %20 : vector<1xf32> to vector<1x1x1xf32>
      %22 = vector.extract %21[0, 0, 0] : f32 from vector<1x1x1xf32>
      %23 = vector.broadcast %22 : f32 to vector<1x8x128xf32>
      %c0_15 = arith.constant 0 : index
      %c0_16 = arith.constant 0 : index
      %c0_17 = arith.constant 0 : index
      %24 = vector.load %arg5[%c0_15, %c0_16, %c0_17] : memref<1x8x128xf32, #tpu.memory_space<vmem>>, vector<1x8x128xf32>
      tpu.vector_store %arg5[%c0_15, %c0_16, %c0_17], %23 {strides = array<i32>} : memref<1x8x128xf32, #tpu.memory_space<vmem>>, vector<1x8x128xf32>,
    } else {
    }
    return
  }
  func.func @transform_0(%arg0: i32, %arg1: i32) -> (i32, i32) {
    %c1_i32 = arith.constant 1 : i32
    %0 = arith.muli %arg0, %c1_i32 : i32
    %1 = arith.addi %0, %arg1 : i32
    %c0_i32 = arith.constant 0 : i32
    %c0_i32_0 = arith.constant 0 : i32
    return %1, %c0_i32 : i32, i32
  }
  func.func @transform_1(%arg0: i32, %arg1: i32) -> (i32, i32) {
    %c1_i32 = arith.constant 1 : i32
    %0 = arith.muli %arg0, %c1_i32 : i32
    %1 = arith.addi %0, %arg1 : i32
    %c0_i32 = arith.constant 0 : i32
    %c0_i32_0 = arith.constant 0 : i32
    return %1, %c0_i32 : i32, i32
  }
  func.func @transform_2(%arg0: i32, %arg1: i32) -> (i32, i32) {
    %c0_i32 = arith.constant 0 : i32
    %c0_i32_0 = arith.constant 0 : i32
    %c0_i32_1 = arith.constant 0 : i32
    return %c0_i32, %c0_i32_0 : i32, i32
  }
  func.func @transform_3(%arg0: i32, %arg1: i32) -> (i32, i32, i32) {
    %c0_i32 = arith.constant 0 : i32
    %c0_i32_0 = arith.constant 0 : i32
    %c0_i32_1 = arith.constant 0 : i32
    return %arg0, %c0_i32, %c0_i32_0 : i32, i32, i32
  }
}

</mosaic_0001>

<bundles_post_ra>
// kernel: tpu_custom_call.1
= control target key start
LH: loop header
LB: loop body
LE: loop exit
PB: predicated region body
PF: predicated region fallthrough
CT: control target
= control target key end

     0   :  { %8 = vsyncpa [#allocation4], 0  ;;  %s255_s0 = inlined_call_operand.hbm [shape: f32[16,128], index: 0, kind: input, shape index: {}]   ;;  %s256_s1 = inlined_call_operand.hbm [shape: f32[16,128], index: 1, kind: input, shape index: {}]   ;;  %s257_s2 = inlined_call_operand.vmem [shape: f32[1,128], index: 2, kind: input, shape index: {}]   ;;  %s258_s3 = inlined_call_operand.hbm [shape: f32[1,8,128], index: 3, kind: output, shape index: {}]  }
   0x1   :  { %9 = vsyncpa [#allocation7], 0 }
   0x2   :  { %10 = vsyncpa [#allocation5], 0  ;;  %s191_s12 = smov [#allocation3]   ;;  %s119_s16 = scalar_lea.hbm %s255_s0, 256 }
   0x3   :  { %s20_s13 = sshll.u32 %s191_s12, 4  ;;  %p120_p0 = scmp.ne.s32.totalorder %s255_s0, %s119_s16  ;;  %s21_s13 = int_to_ptr.vmem [resolvable:$true] %s20_s13 }
   0x4   :  { %p123_p1 = scmp.lt.u32.totalorder %s119_s16, %s255_s0 }
   0x6   :  { %p125_p2 = pnand %p123_p1, %p120_p0 }
   0x8   :  { %128 = shalt.err (!%p125_p2)
}
   0x9   :  { %s129_s21 = scalar_lea.vmem %s21_s13, 256  ;;  %p134_p4 = scmp.lt.s32.totalorder %s21_s13, %s21_s13 }
   0xa   :  { %p130_p3 = scmp.ne.s32.totalorder %s21_s13, %s129_s21  ;;  %p135_p5 = scmp.lt.s32.totalorder %s129_s21, %s129_s21 }
   0xc   :  { %p136_p6 = por %p135_p5, %p134_p4 }
   0xe   :  { %p137_p7 = pnand %p136_p6, %p130_p3 }
  0x10   :  { %140 = shalt.err (!%p137_p7)
}
  0x11   :  { %s192_s22 = smov 128   ;;  %s193_s23 = smov 8  }
  0x12   :  { %26 = dma.hbm_to_vmem [thread:$0]  %s255_s0, 256, %s21_s13, [#allocation4], %s192_s22, %s192_s22, %s193_s23  }
  0x13   :  { %s194_s26 = smov [#allocation6]   ;;  %s141_s30 = scalar_lea.hbm %s256_s1, 256 }
  0x14   :  { %s36_s27 = sshll.u32 %s194_s26, 4  ;;  %p142_p8 = scmp.ne.s32.totalorder %s256_s1, %s141_s30  ;;  %s37_s27 = int_to_ptr.vmem [resolvable:$true] %s36_s27 }
  0x15   :  { %p145_p9 = scmp.lt.u32.totalorder %s141_s30, %s256_s1 }
  0x17   :  { %p147_p10 = pnand %p145_p9, %p142_p8 }
  0x19   :  { %150 = shalt.err (!%p147_p10)
}
  0x1a   :  { %s151_s8 = scalar_lea.vmem %s37_s27, 256  ;;  %p156_p12 = scmp.lt.s32.totalorder %s37_s27, %s37_s27 }
  0x1b   :  { %p152_p11 = scmp.ne.s32.totalorder %s37_s27, %s151_s8  ;;  %p157_p13 = scmp.lt.s32.totalorder %s151_s8, %s151_s8 }
  0x1d   :  { %p158_p0 = por %p157_p13, %p156_p12 }
  0x1f   :  { %p159_p1 = pnand %p158_p0, %p152_p11 }
  0x21   :  { %162 = shalt.err (!%p159_p1)
}
  0x22   :  { %42 = dma.hbm_to_vmem [thread:$0]  %s256_s1, 256, %s37_s27, [#allocation7], %s192_s22, %s192_s22, %s193_s23  }
  0x23   :  { %185 = dma.done.wait [#allocation4], 256  }
  0x24   :  { %186 = vsyncadd [#allocation4], 4294967040 }
  0x25   :  { %187 = dma.done.wait [#allocation7], 256  }
  0x26   :  { %188 = vsyncadd [#allocation7], 4294967040  ;;  %v60_v0 = vld [vmem:[#allocation3] sm:$0xff]  ;;  %v61_v1 = vld [vmem:[#allocation3 + $0x8] sm:$0xff]  ;;  %s195_s1 = smov [#allocation8]  }
  0x27   :  { %v62_v2 = vld [vmem:[#allocation6] sm:$0xff]  ;;  %v63_v3 = vld [vmem:[#allocation6 + $0x8] sm:$0xff]  ;;  %v111_v8 = vld [vmem:[%s257_s2] ss:$0 sm:$0xff]  ;;  %s101_s12 = sshll.u32 %s195_s1, 4  ;;  %s102_s12 = int_to_ptr.vmem [resolvable:$true] %s101_s12 }
  0x28   :  { %v64_v4 = vsub.f32 %v60_v0, %v62_v2  ;;  %v65_v5 = vsub.f32 %v61_v1, %v63_v3  ;;  %s163_s14 = scalar_lea.vmem %s102_s12, 128  ;;  %p168_p3 = scmp.lt.s32.totalorder %s102_s12, %s102_s12 }
  0x29   :  { %p164_p2 = scmp.ne.s32.totalorder %s102_s12, %s163_s14  ;;  %p169_p4 = scmp.lt.s32.totalorder %s163_s14, %s163_s14 }
  0x2a   :  { %v66_v6 = vmul.f32 %v64_v4, %v64_v4  ;;  %v67_v7 = vmul.f32 %v65_v5, %v65_v5 }
  0x2b   :  { %p170_p5 = por %p169_p4, %p168_p3 }
  0x2c   :  { %v69_v9 = vadd.f32 %v67_v7, %v66_v6 }
  0x2d   :  { %p171_p6 = pnand %p170_p5, %p164_p2 }
  0x2e   :  { %v83_v10 = vmul.f32 %v111_v8, %v69_v9 }
  0x30   :  { %84 = vadd.xlane.f32.xlu0 %v83_v10 }
  0xbd   :  { %v85_v11 = vpop.xlane.xlu0 %84 }
  0xbe   :  { %v86_v12 = vrot.slane %v85_v11, 4 }
  0xc0   :  { %v87_v13 = vadd.f32 %v86_v12, %v85_v11 }
  0xc2   :  { %v88_v14 = vrot.slane %v87_v13, 2 }
  0xc4   :  { %v89_v15 = vadd.f32 %v88_v14, %v87_v13 }
  0xc6   :  { %v90_v16 = vrot.slane %v89_v15, 1 }
  0xc8   :  { %v91_v17 = vadd.f32 %v90_v16, %v89_v15 }
  0xca   :  { %112 = vpush %v91_v17 }
  0xfb   :  { %s113_s13 = spop %112 }
  0xfc   :  { %v93_v18 = vstv %s113_s13 }
  0xfd   :  { %94 = vst [vmem:[#allocation8] sm:$0xff] %v93_v18 }
  0xfe   :  { %174 = shalt.err (!%p171_p6)
}
  0xff   :  { %s175_s16 = scalar_lea.hbm %s258_s3, 128 }
 0x100   :  { %p176_p7 = scmp.ne.s32.totalorder %s258_s3, %s175_s16  ;;  %p179_p8 = scmp.lt.u32.totalorder %s175_s16, %s258_s3 }
 0x102   :  { %p181_p9 = pnand %p179_p8, %p176_p7 }
 0x104   :  { %184 = shalt.err (!%p181_p9)
}
 0x105   :  { %104 = dma.vmem_to_hbm [thread:$0]  %s102_s12, 128, %s258_s3, [#allocation5]  }
 0x106   :  { %189 = dma.done.wait [#allocation5], 128  }
 0x107   :  { %190 = vsyncadd [#allocation5], 4294967168 }
 0x108   :  { %108 = vsyncpa [#allocation4], 1 }
 0x109   :  { %109 = vsyncpa [#allocation7], 1 }
 0x10a   :  { %110 = vsyncpa [#allocation5], 1 }

</bundles_post_ra>
